<compile_context>
chip_gen: v6e
topology: v6e:2x2x1
jax: 0.10.0
libtpu: 0.0.40
codegen_flags: <defaults>
</compile_context>

<pallas_src>
import functools

import jax
import jax.numpy as jnp
from jax.experimental import pallas as pl
from jax.experimental.pallas import tpu as pltpu


def _round_up(x, m):
    return ((x + m - 1) // m) * m


def _pick_vmem_limit_bytes():
    """Per-chip scoped-VMEM request (None -> compiler default)."""
    try:
        kind = jax.devices()[0].device_kind.lower()
    except Exception:
        return None
    if "v7" in kind:
        return 56 * 1024 * 1024       # v7x: 64 MiB physical per TensorCore
    if "v5" in kind or "v6" in kind:
        return 100 * 1024 * 1024      # v5e/v6e: 128 MiB physical
    return None                       # unknown chip: use compiler default


_VMEM_LIMIT_BYTES = _pick_vmem_limit_bytes()


def _ffn_kernel(x_ref, w1_ref, b1_ref, w2_ref, b2_ref, o_ref, acc_ref):
    # x_ref:  (tm, d_model)   compute dtype (bf16)
    # w1_ref: (d_model, tf)   compute dtype
    # b1_ref: (1, tf)         f32
    # w2_ref: (tf, d_model)   compute dtype
    # b2_ref: (1, d_model)    f32
    # o_ref:  (tm, d_model)   output dtype
    # acc_ref:(tm, d_model)   f32 accumulator, resident across the f axis
    f = pl.program_id(1)

    @pl.when(f == 0)
    def _init():
        acc_ref[...] = jnp.zeros_like(acc_ref)

    # First GEMM on this d_ff slice, bias + ReLU in f32.
    h = jnp.dot(x_ref[...], w1_ref[...], preferred_element_type=jnp.float32)
    h = jnp.maximum(h + b1_ref[...], 0.0)          # (1, tf) row-broadcast add
    # dropout (eval mode) == identity

    # Second GEMM: bf16 operands, f32 accumulate into the resident accumulator.
    acc_ref[...] += jnp.dot(h.astype(w2_ref.dtype), w2_ref[...],
                            preferred_element_type=jnp.float32)

    @pl.when(f == pl.num_programs(1) - 1)
    def _finalize():
        o_ref[...] = (acc_ref[...] + b2_ref[...]).astype(o_ref.dtype)


@functools.partial(jax.jit, static_argnames=("tm", "tf", "compute_dtype"))
def positionwise_feed_forward(x, w1, b1, w2, b2, *, tm=256, tf=512,
                              compute_dtype=jnp.bfloat16):
    """x: [B, S, d_model] -> [B, S, d_model].

    Weights are stored pre-transposed vs. torch: w1 [d_model, d_ff],
    w2 [d_ff, d_model].
    """
    B, S, d_model = x.shape
    d_ff = w1.shape[1]
    M = B * S

    # ---- tile sizes --------------------------------------------------------
    tm = max(8, _round_up(tm, 8))
    tm = min(tm, _round_up(M, 8))        # don't pad tiny inputs up to 256 rows
    tf = min(tf, d_ff)
    if d_ff % tf != 0:                   # keep the d_ff grid exact
        tf = d_ff
    grid_m = pl.cdiv(M, tm)
    grid_f = d_ff // tf
    M_pad = grid_m * tm

    # ---- operand prep (bf16 hot path, f32 biases) --------------------------
    x2d = x.reshape(M, d_model).astype(compute_dtype)
    if M_pad != M:
        x2d = jnp.pad(x2d, ((0, M_pad - M), (0, 0)))   # masked/padded last tile
    w1c = w1.astype(compute_dtype)
    w2c = w2.astype(compute_dtype)
    b1_2d = b1.reshape(1, d_ff).astype(jnp.float32)
    b2_2d = b2.reshape(1, d_model).astype(jnp.float32)

    # Grid-invariant operands only need a single pipeline buffer.
    single = pl.Buffered(buffer_count=1)
    w_mode = single if grid_f == 1 else None   # weights vary along f otherwise

    out2d = pl.pallas_call(
        _ffn_kernel,
        out_shape=jax.ShapeDtypeStruct((M_pad, d_model), x.dtype),
        grid_spec=pltpu.PrefetchScalarGridSpec(
            num_scalar_prefetch=0,
            grid=(grid_m, grid_f),                       # reduction axis last
            in_specs=[
                pl.BlockSpec((tm, d_model), lambda i, f: (i, 0)),   # x tile
                pl.BlockSpec((d_model, tf), lambda i, f: (0, f),
                             pipeline_mode=w_mode),                 # w1 slice
                pl.BlockSpec((1, tf), lambda i, f: (0, f),
                             pipeline_mode=w_mode),                 # b1 slice
                pl.BlockSpec((tf, d_model), lambda i, f: (f, 0),
                             pipeline_mode=w_mode),                 # w2 slice
                pl.BlockSpec((1, d_model), lambda i, f: (0, 0),
                             pipeline_mode=single),                 # b2
            ],
            out_specs=pl.BlockSpec((tm, d_model), lambda i, f: (i, 0)),
            scratch_shapes=[pltpu.VMEM((tm, d_model), jnp.float32)],
        ),
        compiler_params=pltpu.CompilerParams(
            dimension_semantics=("parallel", "arbitrary"),
            vmem_limit_bytes=_VMEM_LIMIT_BYTES),
    )(x2d, w1c, b1_2d, w2c, b2_2d)

    if M_pad != M:
        out2d = out2d[:M]
    return out2d.reshape(B, S, d_model)


def init_params(key, d_model, d_ff, dtype=jnp.float32):
    """Deterministic init mimicking nn.Linear's U(-1/sqrt(fan_in), 1/sqrt(fan_in))."""
    k1, k2, k3, k4 = jax.random.split(key, 4)
    bound1 = 1.0 / (d_model ** 0.5)
    bound2 = 1.0 / (d_ff ** 0.5)
    # Stored pre-transposed relative to torch's (out, in) convention.
    w1 = jax.random.uniform(k1, (d_model, d_ff), dtype, -bound1, bound1)
    b1 = jax.random.uniform(k2, (d_ff,), dtype, -bound1, bound1)
    w2 = jax.random.uniform(k3, (d_ff, d_model), dtype, -bound2, bound2)
    b2 = jax.random.uniform(k4, (d_model,), dtype, -bound2, bound2)
    return w1, b1, w2, b2


def reference_ffn(x, w1, b1, w2, b2):
    h = jnp.maximum(jnp.einsum("bsd,df->bsf", x, w1) + b1, 0.0)
    return jnp.einsum("bsf,fd->bsd", h, w2) + b2


if __name__ == "__main__":
    # Small demo shapes. S=9 exercises the padded last token tile, and
    # tf=128 with d_ff=256 exercises the d_ff accumulation path.
    B, S, d_model, d_ff = 2, 9, 32, 256

    key = jax.random.PRNGKey(0)
    kx, kp = jax.random.split(key)
    x = jax.random.normal(kx, (B, S, d_model), jnp.float32)
    w1, b1, w2, b2 = init_params(kp, d_model, d_ff)

    out = positionwise_feed_forward(x, w1, b1, w2, b2, tf=128)
    out = jax.block_until_ready(out)

    ref = reference_ffn(x, w1, b1, w2, b2)
    assert out.shape == (B, S, d_model)
    # bf16 operands / f32 accumulation => loosened tolerance vs. f32 reference.
    assert jnp.allclose(out, ref, atol=2e-2, rtol=2e-2), "mismatch vs reference"

    print("KERNEL_OK")
</pallas_src>

<mosaic_0001>
module attributes {stable_mosaic.version = 11 : i64} {
  func.func @_ffn_kernel(%arg0: i32, %arg1: i32, %arg2: memref<24x32xbf16, #tpu.memory_space<vmem>>, %arg3: memref<32x128xbf16, #tpu.memory_space<vmem>>, %arg4: memref<1x128xf32, #tpu.memory_space<vmem>>, %arg5: memref<128x32xbf16, #tpu.memory_space<vmem>>, %arg6: memref<1x32xf32, #tpu.memory_space<vmem>>, %arg7: memref<24x32xf32, #tpu.memory_space<vmem>>, %arg8: memref<24x32xf32, #tpu.memory_space<vmem>>) attributes {dimension_semantics = [#tpu.dimension_semantics<parallel>, #tpu.dimension_semantics<arbitrary>], iteration_bounds = array<i64: 1, 2>, scalar_prefetch = 0 : i64, scratch_operands = 1 : i64, tpu.core_type = #tpu.core_type<tc>, window_params = [{transform_indices = @transform_0, window_bounds = array<i64: 24, 32>}, {transform_indices = @transform_1, window_bounds = array<i64: 32, 128>}, {transform_indices = @transform_2, window_bounds = array<i64: 1, 128>}, {transform_indices = @transform_3, window_bounds = array<i64: 128, 32>}, {pipeline_mode = #tpu.pipeline_mode<synchronous>, transform_indices = @transform_4, window_bounds = array<i64: 1, 32>}, {transform_indices = @transform_5, window_bounds = array<i64: 24, 32>}]} {
    %c0_i32 = arith.constant 0 : i32
    %0 = arith.cmpi eq, %arg1, %c0_i32 : i32
    %1 = arith.extui %0 : i1 to i32
    %c0_i32_0 = arith.constant 0 : i32
    %2 = arith.cmpi ne, %1, %c0_i32_0 : i32
    scf.if %2 {
      %cst_15 = arith.constant 0.000000e+00 : f32
      %20 = vector.broadcast %cst_15 : f32 to vector<24x32xf32>
      %c0_16 = arith.constant 0 : index
      %c0_17 = arith.constant 0 : index
      %21 = vector.load %arg8[%c0_16, %c0_17] : memref<24x32xf32, #tpu.memory_space<vmem>>, vector<24x32xf32>
      tpu.vector_store %arg8[%c0_16, %c0_17], %20 {strides = array<i32>} : memref<24x32xf32, #tpu.memory_space<vmem>>, vector<24x32xf32>,
    } else {
    }
    %c0 = arith.constant 0 : index
    %c0_1 = arith.constant 0 : index
    %3 = vector.load %arg2[%c0, %c0_1] : memref<24x32xbf16, #tpu.memory_space<vmem>>, vector<24x32xbf16>
    %c0_2 = arith.constant 0 : index
    %c0_3 = arith.constant 0 : index
    %4 = vector.load %arg3[%c0_2, %c0_3] : memref<32x128xbf16, #tpu.memory_space<vmem>>, vector<32x128xbf16>
    %cst = arith.constant dense<0.000000e+00> : vector<24x128xf32>
    %5 = tpu.matmul %3, %4, %cst {dimension_numbers = #tpu.dot_dimension_numbers<[1], [0], [0], [1], [0, 0, 1, 1], [], []>} : vector<24x32xbf16>, vector<32x128xbf16>, vector<24x128xf32> -> vector<24x128xf32>
    %c0_4 = arith.constant 0 : index
    %c0_5 = arith.constant 0 : index
    %6 = vector.load %arg4[%c0_4, %c0_5] : memref<1x128xf32, #tpu.memory_space<vmem>>, vector<1x128xf32>
    %7 = vector.broadcast %6 : vector<1x128xf32> to vector<24x128xf32>
    %8 = arith.addf %5, %7 : vector<24x128xf32>
    %cst_6 = arith.constant 0.000000e+00 : f32
    %9 = vector.broadcast %cst_6 : f32 to vector<24x128xf32>
    %10 = arith.maximumf %8, %9 : vector<24x128xf32>
    %c0_7 = arith.constant 0 : index
    %c0_8 = arith.constant 0 : index
    %11 = vector.load %arg8[%c0_7, %c0_8] : memref<24x32xf32, #tpu.memory_space<vmem>>, vector<24x32xf32>
    %12 = arith.truncf %10 : vector<24x128xf32> to vector<24x128xbf16>
    %c0_9 = arith.constant 0 : index
    %c0_10 = arith.constant 0 : index
    %13 = vector.load %arg5[%c0_9, %c0_10] : memref<128x32xbf16, #tpu.memory_space<vmem>>, vector<128x32xbf16>
    %cst_11 = arith.constant dense<0.000000e+00> : vector<24x32xf32>
    %14 = tpu.matmul %12, %13, %cst_11 {dimension_numbers = #tpu.dot_dimension_numbers<[1], [0], [0], [1], [0, 0, 1, 1], [], []>} : vector<24x128xbf16>, vector<128x32xbf16>, vector<24x32xf32> -> vector<24x32xf32>
    %15 = arith.addf %11, %14 : vector<24x32xf32>
    %c0_12 = arith.constant 0 : index
    %c0_13 = arith.constant 0 : index
    %16 = vector.load %arg8[%c0_12, %c0_13] : memref<24x32xf32, #tpu.memory_space<vmem>>, vector<24x32xf32>
    tpu.vector_store %arg8[%c0_12, %c0_13], %15 {strides = array<i32>} : memref<24x32xf32, #tpu.memory_space<vmem>>, vector<24x32xf32>,
    %c1_i32 = arith.constant 1 : i32
    %17 = arith.cmpi eq, %arg1, %c1_i32 : i32
    %18 = arith.extui %17 : i1 to i32
    %c0_i32_14 = arith.constant 0 : i32
    %19 = arith.cmpi ne, %18, %c0_i32_14 : i32
    scf.if %19 {
      %c0_15 = arith.constant 0 : index
      %c0_16 = arith.constant 0 : index
      %20 = vector.load %arg8[%c0_15, %c0_16] : memref<24x32xf32, #tpu.memory_space<vmem>>, vector<24x32xf32>
      %c0_17 = arith.constant 0 : index
      %c0_18 = arith.constant 0 : index
      %21 = vector.load %arg6[%c0_17, %c0_18] : memref<1x32xf32, #tpu.memory_space<vmem>>, vector<1x32xf32>
      %22 = vector.broadcast %21 : vector<1x32xf32> to vector<24x32xf32>
      %23 = arith.addf %20, %22 : vector<24x32xf32>
      %c0_19 = arith.constant 0 : index
      %c0_20 = arith.constant 0 : index
      %24 = vector.load %arg7[%c0_19, %c0_20] : memref<24x32xf32, #tpu.memory_space<vmem>>, vector<24x32xf32>
      tpu.vector_store %arg7[%c0_19, %c0_20], %23 {strides = array<i32>} : memref<24x32xf32, #tpu.memory_space<vmem>>, vector<24x32xf32>,
    } else {
    }
    return
  }
  func.func @transform_0(%arg0: i32, %arg1: i32) -> (i32, i32) {
    %c0_i32 = arith.constant 0 : i32
    %c0_i32_0 = arith.constant 0 : i32
    return %arg0, %c0_i32 : i32, i32
  }
  func.func @transform_1(%arg0: i32, %arg1: i32) -> (i32, i32) {
    %c0_i32 = arith.constant 0 : i32
    %c0_i32_0 = arith.constant 0 : i32
    return %c0_i32, %arg1 : i32, i32
  }
  func.func @transform_2(%arg0: i32, %arg1: i32) -> (i32, i32) {
    %c0_i32 = arith.constant 0 : i32
    %c0_i32_0 = arith.constant 0 : i32
    return %c0_i32, %arg1 : i32, i32
  }
  func.func @transform_3(%arg0: i32, %arg1: i32) -> (i32, i32) {
    %c0_i32 = arith.constant 0 : i32
    %c0_i32_0 = arith.constant 0 : i32
    return %arg1, %c0_i32 : i32, i32
  }
  func.func @transform_4(%arg0: i32, %arg1: i32) -> (i32, i32) {
    %c0_i32 = arith.constant 0 : i32
    %c0_i32_0 = arith.constant 0 : i32
    %c0_i32_1 = arith.constant 0 : i32
    return %c0_i32, %c0_i32_0 : i32, i32
  }
  func.func @transform_5(%arg0: i32, %arg1: i32) -> (i32, i32) {
    %c0_i32 = arith.constant 0 : i32
    %c0_i32_0 = arith.constant 0 : i32
    return %arg0, %c0_i32 : i32, i32
  }
}

</mosaic_0001>

<bundles_post_ra>
// kernel: positionwise_feed_forward.1
= control target key start
LH: loop header
LB: loop body
LE: loop exit
PB: predicated region body
PF: predicated region fallthrough
CT: control target
= control target key end

     0   :  { %s897_s18 = smov 0   ;;  %s899_s19 = smov 0   ;;  %s1013_s0 = inlined_call_operand.vmem [shape: bf16[24,32], index: 0, kind: input, shape index: {}]   ;;  %s1014_s1 = inlined_call_operand.vmem [shape: bf16[32,256], index: 1, kind: input, shape index: {}]   ;;  %s1015_s2 = inlined_call_operand.vmem [shape: f32[1,256], index: 2, kind: input, shape index: {}]   ;;  %s1016_s3 = inlined_call_operand.vmem [shape: bf16[256,32], index: 3, kind: input, shape index: {}]   ;;  %s1017_s4 = inlined_call_operand.vmem [shape: f32[1,32], index: 4, kind: input, shape index: {}]   ;;  %s1018_s5 = inlined_call_operand.vmem [shape: f32[24,32], index: 5, kind: output, shape index: {}]  }
   0x1   :  { %s901_s20 = smov 0   ;;  %s903_s21 = smov 0  }
   0x2   :  { %s905_s22 = smov 0  }
   0x3 LB: > { %s24_s23 = sadd.s32 1, %s860_s21  ;;  %p67_p1 = scmp.ne.s32.totalorder %s852_s19, %s848_s18  ;;  %s864_s22 = sphi %s905_s22, %s15_s22   ;;  %s860_s21 = sphi %s903_s21, %s1022_s21   ;;  %s856_s20 = sphi %s901_s20, %s1021_s20   ;;  %s852_s19 = sphi %s899_s19, %s1020_s19   ;;  %s848_s18 = sphi %s897_s18, %s1019_s18  }
   0x4   : > { %p25_p0 = scmp.ge.s32.totalorder %s24_s23, 2  ;;  %p68_p2 = scmp.eq.s32.totalorder %s864_s22, 0 }
   0x5   : > { %s60_s25 = sadd.s32 1, %s852_s19  ;;  %p702_p5 = scmp.ge.s32.totalorder %s864_s22, 2 }
   0x6   : > { %s1024_s23 = smov (%p25_p0, %s24_s23), 0  ;;  %p69_p3 = por %p68_p2, %p67_p1 }
   0x7   : > { %s57_s24 = ssub.s32 %s860_s21, %s1024_s23  ;;  %204 = sbr.rel (%p702_p5) target bundleno = 18 (0x12), region = 24 }
   0x8   : > { %p58_p4 = scmp.eq.s32.totalorder %s57_s24, 0 }
   0xa   : > { %s932_s26 = scalar_select %p58_p4, %s852_s19, %s60_s25  }
   0xc   : > { %207 = sbr.rel (!%p69_p3) target bundleno = 18 (0x12), region = 28  ;;  %s209_s27 = sand.u32 (%p69_p3), 1, %s852_s19  }
   0xd   : > { %s704_s28 = sshll.u32 (%p69_p3), %s860_s21, 2  ;;  %s703_s29 = sshll.u32 (%p69_p3), %s209_s27, 4 }
   0xe   : > { %s213_s7 = scalar_lea.vmem (%p69_p3), %s1014_s1, %s704_s28  ;;  %s211_s8 = scalar_lea.vmem (%p69_p3), [#allocation3], %s703_s29 }
   0xf   : > { %v230_v0 = vld [vmem:[%s213_s7] sm:$0xf] (%p69_p3)  ;;  %v232_v1 = vld [vmem:[%s213_s7 + $0x8] sm:$0xf] (%p69_p3)  ;;  %v234_v2 = vld [vmem:[%s213_s7 + $0x10] sm:$0xf] (%p69_p3) }
  0x10   : > { %231 = vst [vmem:[%s211_s8] sm:$0xf] (%p69_p3), %v230_v0  ;;  %233 = vst [vmem:[%s211_s8 + $0x4] sm:$0xf] (%p69_p3), %v232_v1  ;;  %v236_v3 = vld [vmem:[%s213_s7 + $0x18] sm:$0xf] (%p69_p3) }
  0x11   : > { %235 = vst [vmem:[%s211_s8 + $0x8] sm:$0xf] %v234_v2  ;;  %237 = vst [vmem:[%s211_s8 + $0xc] sm:$0xf] %v236_v3 }
  0x12 PF: > { %p705_p6 = scmp.ge.s32.totalorder %s864_s22, 1  ;;  %p283_p7 = scmp.lt.s32.totalorder %s864_s22, 3 }
  0x14   : > { %p284_p8 = pnand %p705_p6, %p283_p7 }
  0x15   : > { %s290_s9 = sand.u32 (!%p284_p8), 1, %s848_s18   ;;  %p336_p9 = scmp.lt.s32.totalorder (!%p284_p8), %s856_s20, 1 }
  0x16   : > { %287 = sbr.rel (%p284_p8) target bundleno = 463 (0x1cf), region = 77  ;;  %s706_s10 = sshll.u32 (!%p284_p8), %s290_s9, 4 }
  0x17   : > { %s707_s11 = sshll.u32 (!%p284_p8), %s856_s20, 4  ;;  %s292_s27 = scalar_lea.vmem (!%p284_p8), [#allocation3], %s706_s10 }
  0x18   : > { %p340_p10 = scmp.lt.s32.totalorder (!%p284_p8), %s707_s11, 31  ;;  %p709_p11 = scmp.ne.s32.totalorder (!%p284_p8), %s856_s20, 0 }
  0x1b   : > { %s946_s12 = scalar_select %p336_p9, %s856_s20, 1 }
  0x1c   : > { %s1026_s11 = smov (!%p340_p10, %s707_s11), 31  ;;  %355 = sbr.rel (%p709_p11) target bundleno = 36 (0x24), region = 85 }
  0x1d   : > { %s338_s15 = scalar_lea.vmem %s1015_s2, %s946_s12  ;;  %s708_s16 = sshll.u32 %s1026_s11, 2 }
  0x1e   : > { %s955_s25 = scalar_lea.vmem %s1016_s3, %s708_s16 }
  0x21   : > { %vm356_vm0 = vcmask 261120   ;;  %v866_v4 = vmov 0.0  }
  0x22   : > { %357 = vst.msk [vmem:[#allocation2] sm:$0xff] %vm356_vm0, %v866_v4  ;;  %358 = vst.msk [vmem:[#allocation2 + $0x8] sm:$0xff] %vm356_vm0, %v866_v4 }
  0x23   : > { %359 = vst.msk [vmem:[#allocation2 + $0x10] sm:$0xff] %vm356_vm0, %v866_v4 }
  0x24 PF: > { %v814_v5 = vld [vmem:[%s292_s27 + $0x8] sm:$0xff]   ;;  %v815_v6 = vld [vmem:[%s292_s27] sm:$0xff]   ;;  %vm394_vm1 = vcmask 261120   ;;  %p725_p12 = scmp.ne.s32.totalorder %s856_s20, 1 }
  0x25   : > { %745 = vmatprep.subr.bf16.mxu0 %v814_v5  ;;  %v816_v7 = vld [vmem:[%s1013_s0] sm:$0xff]   ;;  %v818_v8 = vld [vmem:[%s955_s25 + $0x38] sm:$0xff]   ;;  %v819_v9 = vld [vmem:[%s955_s25 + $0x30] sm:$0xff]  }
  0x26   : > { %746 = vmatpush3.bf16.msra.mxu0 %v814_v5  ;;  %749 = vmatprep.mubr.msk.bf16.mxu0 %vm394_vm1, %v816_v7  ;;  %v817_v10 = vld [vmem:[%s1013_s0 + $0x8] ss:$0 sps:$4 sm:$0xff]   ;;  %v821_v12 = vld [vmem:[%s955_s25 + $0x20] sm:$0xff]   ;;  %v822_v13 = vld [vmem:[%s955_s25 + $0x18] sm:$0xff]  }
  0x27   : > { %747 = vmatprep.subr.bf16.mxu0 %v815_v6  ;;  %753 = vmatprep.subr.bf16.mxu1 %v818_v8  ;;  %v820_v11 = vld [vmem:[%s955_s25 + $0x28] sm:$0xff]   ;;  %v823_v14 = vld [vmem:[%s955_s25 + $0x10] sm:$0xff]   ;;  %v825_v16 = vld [vmem:[%s955_s25] sm:$0xff]  }
  0x28   : > { %754 = vmatpush3.bf16.msra.mxu1 %v818_v8  ;;  %v824_v15 = vld [vmem:[%s955_s25 + $0x8] sm:$0xff]   ;;  %v710_v18 = vld [vmem:[%s338_s15] ss:$0 sm:$0xff] }
  0x29   : > { %755 = vmatprep.subr.bf16.mxu1 %v819_v9  ;;  %v452_v32 = vld [vmem:[#allocation2] sm:$0xff]  ;;  %v453_v37 = vld [vmem:[#allocation2 + $0x8] sm:$0xff] }
  0x2a   : > { %748 = vmatpush3.bf16.msra.mxu0 %v815_v6  ;;  %v454_v30 = vld [vmem:[#allocation2 + $0x10] sm:$0xff] }
  0x2c   : > { %756 = vmatpush3.bf16.msra.mxu1 %v819_v9 }
  0x2d   : > { %750 = vmatmul.mubr.msk.bf16.vlgmr.msra.gmra.mxu0 %vm394_vm1, %v817_v10  ;;  %757 = vmatprep.subr.bf16.mxu1 %v820_v11 }
  0x30   : > { %758 = vmatpush3.bf16.msra.mxu1 %v820_v11 }
  0x31   : > { %759 = vmatprep.subr.bf16.mxu1 %v821_v12 }
  0x34   : > { %760 = vmatpush3.bf16.msra.mxu1 %v821_v12 }
  0x35   : > { %761 = vmatprep.subr.bf16.mxu1 %v822_v13 }
  0x38   : > { %762 = vmatpush3.bf16.msra.mxu1 %v822_v13 }
  0x39   : > { %763 = vmatprep.subr.bf16.mxu1 %v823_v14 }
  0x3c   : > { %764 = vmatpush3.bf16.msra.mxu1 %v823_v14 }
  0x3d   : > { %765 = vmatprep.subr.bf16.mxu1 %v824_v15 }
  0x40   : > { %766 = vmatpush3.bf16.msra.mxu1 %v824_v15 }
  0x41   : > { %767 = vmatprep.subr.bf16.mxu1 %v825_v16 }
  0x44   : > { %768 = vmatpush3.bf16.msra.mxu1 %v825_v16 }
  0xed   : > { %v751_v17 = vpop.f32.mrf.mxu0 }
  0xee   : > { %v444_v20 = vadd.f32 %v751_v17, %v710_v18 }
  0xef   : > { %v435_v19 = vpop.f32.mrf.mxu0 }
  0xf0   : > { %v436_v22 = vadd.f32 %v710_v18, %v435_v19  ;;  %v451_v25 = vmax.f32 %v444_v20, 0.0 }
  0xf1   : > { %v752_v21 = vpop.f32.mrf.mxu0 }
  0xf2   : > { %v449_v26 = vmax.f32 %v436_v22, 0.0  ;;  %v456_v29 = vpack.c.bf16 %v451_v25, %v451_v25 }
  0xf3   : > { %v438_v23 = vpop.f32.mrf.mxu0 }
  0xf4   : > { %v439_v24 = vadd.f32 %v710_v18, %v438_v23 }
  0xf6   : > { %v450_v27 = vmax.f32 %v439_v24, 0.0 }
  0xf8   : > { %v455_v28 = vpack.c.bf16 %v450_v27, %v449_v26 }
  0xfa   : > { %769 = vmatprep.mubr.bf16.mxu1 %v455_v28 }
  0xfb   : > { %770 = vmatmul.mubr.bf16.vlgmr.msra.gmra.mxu1 %v456_v29 }
 0x1bb   : > { %v771_v31 = vpop.f32.mrf.mxu1 }
 0x1bc   : > { %v571_v33 = vadd.f32 %v771_v31, %v454_v30 }
 0x1bd   : > { %v555_v34 = vpop.f32.mrf.mxu1 }
 0x1be   : > { %574 = vst.msk [vmem:[#allocation2 + $0x10] sm:$0xff] %vm394_vm1, %v571_v33  ;;  %v569_v35 = vadd.f32 %v555_v34, %v452_v32 }
 0x1bf   : > { %v772_v36 = vpop.f32.mrf.mxu1 }
 0x1c0   : > { %572 = vst.msk [vmem:[#allocation2] sm:$0xff] %vm394_vm1, %v569_v35  ;;  %578 = sbr.rel (%p725_p12) target bundleno = 463 (0x1cf), region = 89 }
 0x1c1   : > { %v558_v38 = vpop.f32.mrf.mxu1 }
 0x1c2   : > { %v570_v39 = vadd.f32 %v558_v38, %v453_v37 }
 0x1c4   : > { %573 = vst.msk [vmem:[#allocation2 + $0x8] sm:$0xff] %vm394_vm1, %v570_v39 }
 0x1c5   : > { %v726_v41 = vld [vmem:[%s1017_s4] ss:$0 sm:$0xff]  ;;  %v581_v45 = vld [vmem:[#allocation2 + $0x10] sm:$0xff] }
 0x1c6   : > { %v591_v46 = vadd.f32 %v726_v41, %v581_v45 }
 0x1c7   : > { %v579_v40 = vld [vmem:[#allocation2] sm:$0xff] }
 0x1c8   : > { %v589_v43 = vadd.f32 %v726_v41, %v579_v40  ;;  %594 = vst.msk [vmem:[%s1018_s5 + $0x10] sm:$0xff] %vm394_vm1, %v591_v46 }
 0x1ca   : > { %592 = vst.msk [vmem:[%s1018_s5] sm:$0xff] %vm394_vm1, %v589_v43 }
 0x1cb   : > { %v580_v42 = vld [vmem:[#allocation2 + $0x8] sm:$0xff] }
 0x1cc   : > { %v590_v44 = vadd.f32 %v726_v41, %v580_v42 }
 0x1ce   : > { %593 = vst.msk [vmem:[%s1018_s5 + $0x8] sm:$0xff] %vm394_vm1, %v590_v44 }
 0x1cf PF: > { %s15_s22 = sadd.s32 1, %s864_s22   ;;  %s1019_s18 = smov %s852_s19 }
 0x1d0   : > { %p12_p13 = scmp.ge.s32.totalorder %s15_s22, 4   ;;  %s1020_s19 = smov %s932_s26 }
 0x1d1   : > { %s1021_s20 = smov %s860_s21  ;;  %s1022_s21 = smov %s1024_s23 }
 0x1d2   :  { %14 = sbr.rel (!%p12_p13) target bundleno = 3 (0x3), region = 133 }

</bundles_post_ra>
